<compile_context>
chip_gen: v7x
topology: tpu7x:2x2x1
jax: 0.10.0
libtpu: 0.0.40
codegen_flags: <defaults>
</compile_context>

<pallas_src>
import functools

import jax
import jax.numpy as jnp
from jax.experimental import pallas as pl
from jax.experimental.pallas import tpu as pltpu


# NOTE: must stay a FINITE value (f32 min), never -inf.  Padded columns keep
# this value in the logits while their targets are masked to 0, so t*x == 0
# exactly; -inf would reintroduce 0*inf = NaN on padded columns.
_NEG_LARGE = float(jnp.finfo(jnp.float32).min)

_TB_CAP = 2048          # max batch-tile rows
_TC_CAP = 2048          # max class-tile lanes on the class-tiled path


def _round_up(x, m):
    return -(-x // m) * m


def _tpu_params():
    """(vmem_capacity_bytes, num_tensorcores) with conservative fallbacks."""
    vmem_cap = None
    cores = 1
    try:
        info = pltpu.get_tpu_info()
        v = getattr(info, "vmem_capacity_bytes", None)
        if isinstance(v, int) and v > 0:
            vmem_cap = v
        for attr in ("num_cores", "core_count", "tensorcore_count",
                     "num_tensorcores"):
            c = getattr(info, attr, None)
            if isinstance(c, int) and c > 0:
                cores = c
                break
    except Exception:
        pass
    try:
        kind = jax.devices()[0].device_kind.lower()
    except Exception:
        kind = ""
    if cores == 1 and any(s in kind for s in ("v4", "v5p", "v7", "7x")):
        cores = 2                      # megacore / dual-TC chips
    if vmem_cap is None:
        if not kind or "v7" in kind or "7x" in kind:
            vmem_cap = 64 << 20        # conservative (v7x-sized) default
        else:
            vmem_cap = 128 << 20       # v2..v6
    return vmem_cap, cores


def _vmem_limit_bytes(vmem_cap):
    if vmem_cap >= (128 << 20):
        return 108 << 20               # v5e/v6e: use most of the 128 MiB
    return max(16 << 20, min(vmem_cap - (8 << 20), 56 << 20))   # v7x: <= 56 MiB


def _pick_tiles(B, C, itemsize, vmem_limit, num_cores):
    """Choose (tb, tc) so the whole pipeline fits the per-chip VMEM budget."""
    sub = 16 if itemsize == 2 else 8
    b_pad = _round_up(B, sub)
    c_pad = _round_up(C, 128)

    # Fixed reserve: 4 lane-padded (tb,1)->(tb,128) f32 scratch accumulators
    # plus slack for the output slab / compiler internals.
    reserve = 4 * min(b_pad, _TB_CAP) * 128 * 4 + (2 << 20)
    usable = max(vmem_limit - reserve, 4 << 20)
    # Per input element: 2 inputs x 2 pipeline buffers at native dtype, plus
    # ~4 full-tile f32 elementwise temporaries from the lowering.
    per_elem = 4 * itemsize + 16
    elems = usable // per_elem

    if c_pad * sub <= elems:
        tc = C                                   # full class axis: no col mask
        tb = (elems // c_pad) // sub * sub
    else:
        tc = max(128, min((elems // sub) // 128 * 128, c_pad, _TC_CAP))
        tb = (elems // tc) // sub * sub
    tb = max(sub, min(tb, b_pad, _TB_CAP))

    # Multi-TensorCore chips: make sure the "parallel" batch axis has >= 2
    # tiles so both cores get work.  (Skipped on single-core chips.)
    if num_cores >= 2 and b_pad >= 2 * sub:
        tb = min(tb, _round_up(pl.cdiv(b_pad, 2), sub))
    return tb, tc


def _vector_ce_kernel(x_ref, t_ref, out_ref, m_sc, l_sc, tx_sc, ts_sc, *,
                      total_rows, total_cols, tb, tc, mask_rows, mask_cols):
    i = pl.program_id(0)          # batch tile   ("parallel")
    j = pl.program_id(1)          # class tile   ("arbitrary" reduction axis)
    n_c = pl.num_programs(1)

    @pl.when(j == 0)
    def _():
        m_sc[...] = jnp.full_like(m_sc, _NEG_LARGE)
        l_sc[...] = jnp.zeros_like(l_sc)
        tx_sc[...] = jnp.zeros_like(tx_sc)
        ts_sc[...] = jnp.zeros_like(ts_sc)

    def accumulate(xm, t):
        # xm: logits, padded columns (if any) hold the FINITE _NEG_LARGE.
        # t : targets, padded columns (if any) hold 0 -> t*xm == 0 there.
        m_prev = m_sc[...]                                        # (tb, 1)
        m_new = jnp.maximum(m_prev, jnp.max(xm, axis=1, keepdims=True))
        l_sc[...] = (l_sc[...] * jnp.exp(m_prev - m_new)
                     + jnp.sum(jnp.exp(xm - m_new), axis=1, keepdims=True))
        m_sc[...] = m_new
        tx_sc[...] += jnp.sum(t * xm, axis=1, keepdims=True)
        ts_sc[...] += jnp.sum(t, axis=1, keepdims=True)

    x = x_ref[...].astype(jnp.float32)     # (tb, tc) logits
    t = t_ref[...].astype(jnp.float32)     # (tb, tc) soft targets

    if mask_cols:
        # Only the LAST class tile has out-of-bounds columns; interior tiles
        # run the unmasked fast path.
        @pl.when(j < n_c - 1)
        def _():
            accumulate(x, t)

        @pl.when(j == n_c - 1)
        def _():
            lane = jax.lax.broadcasted_iota(jnp.int32, (1, tc), 1)
            ok = lane < (total_cols - j * tc)       # (1, tc), broadcasts in where
            accumulate(jnp.where(ok, x, _NEG_LARGE), jnp.where(ok, t, 0.0))
    else:
        accumulate(x, t)

    @pl.when(j == n_c - 1)
    def _():
        lse = m_sc[...] + jnp.log(l_sc[...])                      # (tb, 1)
        per_row = lse * ts_sc[...] - tx_sc[...]                   # (tb, 1)
        if mask_rows:
            # Padded rows may contain garbage (even NaN/Inf); zeroing per_row
            # here is load-bearing since row work is fully row-independent.
            row = jax.lax.broadcasted_iota(jnp.int32, (tb, 1), 0) + i * tb
            per_row = jnp.where(row < total_rows, per_row, 0.0)
        partial = jnp.sum(per_row)          # scalar, once per batch tile
        lane = jax.lax.broadcasted_iota(jnp.int32, (1, 8, 128), 2)
        sub = jax.lax.broadcasted_iota(jnp.int32, (1, 8, 128), 1)
        out_ref[...] = jnp.where((lane == 0) & (sub == 0), partial, 0.0)


def vector_ce_loss(output, target, *, size_average=True, tb=None, tc=None):
    """Soft-target cross entropy (PyTorch VectorCELoss.forward)."""
    B, C = output.shape
    assert target.shape == (B, C)
    itemsize = jnp.dtype(output.dtype).itemsize

    vmem_cap, num_cores = _tpu_params()
    vmem_limit = _vmem_limit_bytes(vmem_cap)
    auto_tb, auto_tc = _pick_tiles(B, C, itemsize, vmem_limit, num_cores)
    tb = auto_tb if tb is None else tb
    tc = auto_tc if tc is None else tc
    n_b = pl.cdiv(B, tb)
    n_c = pl.cdiv(C, tc)

    kernel = functools.partial(
        _vector_ce_kernel,
        total_rows=B, total_cols=C, tb=tb, tc=tc,
        mask_rows=(B % tb != 0), mask_cols=(C % tc != 0))

    cost = pl.CostEstimate(
        flops=int(8 * B * C),
        transcendentals=int(B * C),
        bytes_accessed=int(2 * B * C * itemsize + n_b * 8 * 128 * 4))

    partials = pl.pallas_call(
        kernel,
        out_shape=jax.ShapeDtypeStruct((n_b, 8, 128), jnp.float32),
        grid_spec=pltpu.PrefetchScalarGridSpec(
            num_scalar_prefetch=0,
            grid=(n_b, n_c),
            in_specs=[pl.BlockSpec((tb, tc), lambda i, j: (i, j)),
                      pl.BlockSpec((tb, tc), lambda i, j: (i, j))],
            out_specs=pl.BlockSpec((1, 8, 128), lambda i, j: (i, 0, 0)),
            scratch_shapes=[pltpu.VMEM((tb, 1), jnp.float32)] * 4,
        ),
        compiler_params=pltpu.CompilerParams(
            dimension_semantics=("parallel", "arbitrary"),
            vmem_limit_bytes=int(vmem_limit),
        ),
        cost_estimate=cost,
    )(output, target)

    total = jnp.sum(partials)
    if size_average:
        total = total / jnp.float32(B)
    return total


def _reference(output, target, size_average=True):
    logp = jax.nn.log_softmax(output.astype(jnp.float32), axis=1)
    per_row = jnp.sum(-target.astype(jnp.float32) * logp, axis=1)
    return jnp.mean(per_row) if size_average else jnp.sum(per_row)


def _check(name, got, want, rtol=1e-5, atol=1e-4):
    got = jax.block_until_ready(got)
    assert jnp.allclose(got, want, rtol=rtol, atol=atol), (name, got, want)


if __name__ == "__main__":
    key = jax.random.PRNGKey(0)
    k1, k2, k3, k4 = jax.random.split(key, 4)

    # 1) Small shape, matches the module's (N, C) convention.
    B, C = 16, 32
    logits = jax.random.normal(k1, (B, C), dtype=jnp.float32) * 2.0
    target = jax.nn.softmax(jax.random.normal(k2, (B, C), dtype=jnp.float32), axis=1)
    _check("small/mean", vector_ce_loss(logits, target, size_average=True),
           _reference(logits, target, True))
    _check("small/sum", vector_ce_loss(logits, target, size_average=False),
           _reference(logits, target, False))

    # 2) Forced class tiling + ragged batch/class edges
    #    (online-LSE + last-tile-only column masking).
    B2, C2 = 20, 300
    logits2 = jax.random.normal(k3, (B2, C2), dtype=jnp.float32) * 3.0
    target2 = jax.nn.softmax(jax.random.normal(k4, (B2, C2), dtype=jnp.float32), axis=1)
    _check("tiled/mean",
           vector_ce_loss(logits2, target2, size_average=True, tb=16, tc=128),
           _reference(logits2, target2, True))
    _check("tiled/sum",
           vector_ce_loss(logits2, target2, size_average=False, tb=16, tc=128),
           _reference(logits2, target2, False))

    # 3) Auto-tiled, batch not divisible by the chosen tile (row masking path,
    #    multi-core tb clamp exercised on dual-TC chips).
    k5, k6 = jax.random.split(k1)
    B3, C3 = 100, 1000
    logits3 = jax.random.normal(k5, (B3, C3), dtype=jnp.float32)
    target3 = jax.nn.softmax(jax.random.normal(k6, (B3, C3), dtype=jnp.float32), axis=1)
    _check("auto/mean", vector_ce_loss(logits3, target3, size_average=True),
           _reference(logits3, target3, True), atol=1e-3)

    print("KERNEL_OK")
</pallas_src>

<mosaic_0001>
module attributes {stable_mosaic.version = 11 : i64} {
  func.func @_vector_ce_kernel(%arg0: i32, %arg1: i32, %arg2: memref<16x32xf32, #tpu.memory_space<vmem>>, %arg3: memref<16x32xf32, #tpu.memory_space<vmem>>, %arg4: memref<1x8x128xf32, #tpu.memory_space<vmem>>, %arg5: memref<16x1xf32, #tpu.memory_space<vmem>>, %arg6: memref<16x1xf32, #tpu.memory_space<vmem>>, %arg7: memref<16x1xf32, #tpu.memory_space<vmem>>, %arg8: memref<16x1xf32, #tpu.memory_space<vmem>>) attributes {dimension_semantics = [#tpu.dimension_semantics<parallel>, #tpu.dimension_semantics<arbitrary>], iteration_bounds = array<i64: 1, 1>, scalar_prefetch = 0 : i64, scratch_operands = 4 : i64, tpu.core_type = #tpu.core_type<tc>, window_params = [{transform_indices = @transform_0, window_bounds = array<i64: 16, 32>}, {transform_indices = @transform_1, window_bounds = array<i64: 16, 32>}, {transform_indices = @transform_2, window_bounds = array<i64: 1, 8, 128>}]} {
    %c0_i32 = arith.constant 0 : i32
    %0 = arith.cmpi eq, %arg1, %c0_i32 : i32
    %1 = arith.extui %0 : i1 to i32
    %c0_i32_0 = arith.constant 0 : i32
    %2 = arith.cmpi ne, %1, %c0_i32_0 : i32
    scf.if %2 {
      %cst_25 = arith.constant -3.40282347E+38 : f32
      %35 = vector.broadcast %cst_25 : f32 to vector<16x1xf32>
      %c0_26 = arith.constant 0 : index
      %c0_27 = arith.constant 0 : index
      %36 = vector.load %arg5[%c0_26, %c0_27] : memref<16x1xf32, #tpu.memory_space<vmem>>, vector<16x1xf32>
      tpu.vector_store %arg5[%c0_26, %c0_27], %35 {strides = array<i32>} : memref<16x1xf32, #tpu.memory_space<vmem>>, vector<16x1xf32>,
      %cst_28 = arith.constant 0.000000e+00 : f32
      %37 = vector.broadcast %cst_28 : f32 to vector<16x1xf32>
      %c0_29 = arith.constant 0 : index
      %c0_30 = arith.constant 0 : index
      %38 = vector.load %arg6[%c0_29, %c0_30] : memref<16x1xf32, #tpu.memory_space<vmem>>, vector<16x1xf32>
      tpu.vector_store %arg6[%c0_29, %c0_30], %37 {strides = array<i32>} : memref<16x1xf32, #tpu.memory_space<vmem>>, vector<16x1xf32>,
      %cst_31 = arith.constant 0.000000e+00 : f32
      %39 = vector.broadcast %cst_31 : f32 to vector<16x1xf32>
      %c0_32 = arith.constant 0 : index
      %c0_33 = arith.constant 0 : index
      %40 = vector.load %arg7[%c0_32, %c0_33] : memref<16x1xf32, #tpu.memory_space<vmem>>, vector<16x1xf32>
      tpu.vector_store %arg7[%c0_32, %c0_33], %39 {strides = array<i32>} : memref<16x1xf32, #tpu.memory_space<vmem>>, vector<16x1xf32>,
      %cst_34 = arith.constant 0.000000e+00 : f32
      %41 = vector.broadcast %cst_34 : f32 to vector<16x1xf32>
      %c0_35 = arith.constant 0 : index
      %c0_36 = arith.constant 0 : index
      %42 = vector.load %arg8[%c0_35, %c0_36] : memref<16x1xf32, #tpu.memory_space<vmem>>, vector<16x1xf32>
      tpu.vector_store %arg8[%c0_35, %c0_36], %41 {strides = array<i32>} : memref<16x1xf32, #tpu.memory_space<vmem>>, vector<16x1xf32>,
    } else {
    }
    %c0 = arith.constant 0 : index
    %c0_1 = arith.constant 0 : index
    %3 = vector.load %arg2[%c0, %c0_1] : memref<16x32xf32, #tpu.memory_space<vmem>>, vector<16x32xf32>
    %c0_2 = arith.constant 0 : index
    %c0_3 = arith.constant 0 : index
    %4 = vector.load %arg3[%c0_2, %c0_3] : memref<16x32xf32, #tpu.memory_space<vmem>>, vector<16x32xf32>
    %c0_4 = arith.constant 0 : index
    %c0_5 = arith.constant 0 : index
    %5 = vector.load %arg5[%c0_4, %c0_5] : memref<16x1xf32, #tpu.memory_space<vmem>>, vector<16x1xf32>
    %cst = arith.constant dense<0xFF800000> : vector<16xf32>
    %6 = vector.multi_reduction <maximumf>, %3, %cst [1] : vector<16x32xf32> to vector<16xf32>
    %7 = vector.shape_cast %6 : vector<16xf32> to vector<16x1xf32>
    %8 = arith.maximumf %5, %7 : vector<16x1xf32>
    %c0_6 = arith.constant 0 : index
    %c0_7 = arith.constant 0 : index
    %9 = vector.load %arg6[%c0_6, %c0_7] : memref<16x1xf32, #tpu.memory_space<vmem>>, vector<16x1xf32>
    %10 = arith.subf %5, %8 : vector<16x1xf32>
    %11 = math.exp %10 : vector<16x1xf32>
    %12 = arith.mulf %9, %11 : vector<16x1xf32>
    %13 = vector.broadcast %8 : vector<16x1xf32> to vector<16x32xf32>
    %14 = arith.subf %3, %13 : vector<16x32xf32>
    %15 = math.exp %14 : vector<16x32xf32>
    %cst_8 = arith.constant dense<0.000000e+00> : vector<16xf32>
    %16 = vector.multi_reduction <add>, %15, %cst_8 [1] : vector<16x32xf32> to vector<16xf32>
    %17 = vector.shape_cast %16 : vector<16xf32> to vector<16x1xf32>
    %18 = arith.addf %12, %17 : vector<16x1xf32>
    %c0_9 = arith.constant 0 : index
    %c0_10 = arith.constant 0 : index
    %19 = vector.load %arg6[%c0_9, %c0_10] : memref<16x1xf32, #tpu.memory_space<vmem>>, vector<16x1xf32>
    tpu.vector_store %arg6[%c0_9, %c0_10], %18 {strides = array<i32>} : memref<16x1xf32, #tpu.memory_space<vmem>>, vector<16x1xf32>,
    %c0_11 = arith.constant 0 : index
    %c0_12 = arith.constant 0 : index
    %20 = vector.load %arg5[%c0_11, %c0_12] : memref<16x1xf32, #tpu.memory_space<vmem>>, vector<16x1xf32>
    tpu.vector_store %arg5[%c0_11, %c0_12], %8 {strides = array<i32>} : memref<16x1xf32, #tpu.memory_space<vmem>>, vector<16x1xf32>,
    %c0_13 = arith.constant 0 : index
    %c0_14 = arith.constant 0 : index
    %21 = vector.load %arg7[%c0_13, %c0_14] : memref<16x1xf32, #tpu.memory_space<vmem>>, vector<16x1xf32>
    %22 = arith.mulf %4, %3 : vector<16x32xf32>
    %cst_15 = arith.constant dense<0.000000e+00> : vector<16xf32>
    %23 = vector.multi_reduction <add>, %22, %cst_15 [1] : vector<16x32xf32> to vector<16xf32>
    %24 = vector.shape_cast %23 : vector<16xf32> to vector<16x1xf32>
    %25 = arith.addf %21, %24 : vector<16x1xf32>
    %c0_16 = arith.constant 0 : index
    %c0_17 = arith.constant 0 : index
    %26 = vector.load %arg7[%c0_16, %c0_17] : memref<16x1xf32, #tpu.memory_space<vmem>>, vector<16x1xf32>
    tpu.vector_store %arg7[%c0_16, %c0_17], %25 {strides = array<i32>} : memref<16x1xf32, #tpu.memory_space<vmem>>, vector<16x1xf32>,
    %c0_18 = arith.constant 0 : index
    %c0_19 = arith.constant 0 : index
    %27 = vector.load %arg8[%c0_18, %c0_19] : memref<16x1xf32, #tpu.memory_space<vmem>>, vector<16x1xf32>
    %cst_20 = arith.constant dense<0.000000e+00> : vector<16xf32>
    %28 = vector.multi_reduction <add>, %4, %cst_20 [1] : vector<16x32xf32> to vector<16xf32>
    %29 = vector.shape_cast %28 : vector<16xf32> to vector<16x1xf32>
    %30 = arith.addf %27, %29 : vector<16x1xf32>
    %c0_21 = arith.constant 0 : index
    %c0_22 = arith.constant 0 : index
    %31 = vector.load %arg8[%c0_21, %c0_22] : memref<16x1xf32, #tpu.memory_space<vmem>>, vector<16x1xf32>
    tpu.vector_store %arg8[%c0_21, %c0_22], %30 {strides = array<i32>} : memref<16x1xf32, #tpu.memory_space<vmem>>, vector<16x1xf32>,
    %c0_i32_23 = arith.constant 0 : i32
    %32 = arith.cmpi eq, %arg1, %c0_i32_23 : i32
    %33 = arith.extui %32 : i1 to i32
    %c0_i32_24 = arith.constant 0 : i32
    %34 = arith.cmpi ne, %33, %c0_i32_24 : i32
    scf.if %34 {
      %c0_25 = arith.constant 0 : index
      %c0_26 = arith.constant 0 : index
      %35 = vector.load %arg5[%c0_25, %c0_26] : memref<16x1xf32, #tpu.memory_space<vmem>>, vector<16x1xf32>
      %c0_27 = arith.constant 0 : index
      %c0_28 = arith.constant 0 : index
      %36 = vector.load %arg6[%c0_27, %c0_28] : memref<16x1xf32, #tpu.memory_space<vmem>>, vector<16x1xf32>
      %37 = math.log %36 : vector<16x1xf32>
      %38 = arith.addf %35, %37 : vector<16x1xf32>
      %c0_29 = arith.constant 0 : index
      %c0_30 = arith.constant 0 : index
      %39 = vector.load %arg8[%c0_29, %c0_30] : memref<16x1xf32, #tpu.memory_space<vmem>>, vector<16x1xf32>
      %40 = arith.mulf %38, %39 : vector<16x1xf32>
      %c0_31 = arith.constant 0 : index
      %c0_32 = arith.constant 0 : index
      %41 = vector.load %arg7[%c0_31, %c0_32] : memref<16x1xf32, #tpu.memory_space<vmem>>, vector<16x1xf32>
      %42 = arith.subf %40, %41 : vector<16x1xf32>
      %43 = vector.shape_cast %42 : vector<16x1xf32> to vector<1x16x1xf32>
      %cst_33 = arith.constant dense<0.000000e+00> : vector<1xf32>
      %44 = vector.multi_reduction <add>, %43, %cst_33 [1, 2] : vector<1x16x1xf32> to vector<1xf32>
      %45 = vector.shape_cast %44 : vector<1xf32> to vector<1x1x1xf32>
      %46 = vector.extract %45[0, 0, 0] : f32 from vector<1x1x1xf32>
      %47 = tpu.iota {dimensions = array<i32: 2>} : vector<1x8x128xi32>
      %48 = tpu.iota {dimensions = array<i32: 1>} : vector<1x8x128xi32>
      %c0_i32_34 = arith.constant 0 : i32
      %49 = vector.broadcast %c0_i32_34 : i32 to vector<1x8x128xi32>
      %50 = arith.cmpi eq, %47, %49 : vector<1x8x128xi32>
      %c0_i32_35 = arith.constant 0 : i32
      %51 = vector.broadcast %c0_i32_35 : i32 to vector<1x8x128xi32>
      %52 = arith.cmpi eq, %48, %51 : vector<1x8x128xi32>
      %53 = arith.andi %50, %52 : vector<1x8x128xi1>
      %cst_36 = arith.constant 0.000000e+00 : f32
      %54 = vector.broadcast %46 : f32 to vector<1x8x128xf32>
      %55 = vector.broadcast %cst_36 : f32 to vector<1x8x128xf32>
      %56 = arith.select %53, %54, %55 : vector<1x8x128xi1>, vector<1x8x128xf32>
      %c0_37 = arith.constant 0 : index
      %c0_38 = arith.constant 0 : index
      %c0_39 = arith.constant 0 : index
      %57 = vector.load %arg4[%c0_37, %c0_38, %c0_39] : memref<1x8x128xf32, #tpu.memory_space<vmem>>, vector<1x8x128xf32>
      tpu.vector_store %arg4[%c0_37, %c0_38, %c0_39], %56 {strides = array<i32>} : memref<1x8x128xf32, #tpu.memory_space<vmem>>, vector<1x8x128xf32>,
    } else {
    }
    return
  }
  func.func @transform_0(%arg0: i32, %arg1: i32) -> (i32, i32) {
    %c0_i32 = arith.constant 0 : i32
    return %arg0, %arg1 : i32, i32
  }
  func.func @transform_1(%arg0: i32, %arg1: i32) -> (i32, i32) {
    %c0_i32 = arith.constant 0 : i32
    return %arg0, %arg1 : i32, i32
  }
  func.func @transform_2(%arg0: i32, %arg1: i32) -> (i32, i32, i32) {
    %c0_i32 = arith.constant 0 : i32
    %c0_i32_0 = arith.constant 0 : i32
    %c0_i32_1 = arith.constant 0 : i32
    return %arg0, %c0_i32, %c0_i32_0 : i32, i32, i32
  }
}

</mosaic_0001>

<bundles_post_ra>
// kernel: tpu_custom_call.1
= control target key start
LH: loop header
LB: loop body
LE: loop exit
PB: predicated region body
PF: predicated region fallthrough
CT: control target
= control target key end

     0   :  { %7 = vsyncpa [#allocation7], 0  ;;  %s373_s0 = inlined_call_operand.hbm [shape: f32[16,32], index: 0, kind: input, shape index: {}]   ;;  %s374_s1 = inlined_call_operand.hbm [shape: f32[16,32], index: 1, kind: input, shape index: {}]   ;;  %s375_s2 = inlined_call_operand.hbm [shape: f32[1,8,128], index: 2, kind: output, shape index: {}]  }
   0x1   :  { %8 = vsyncpa [#allocation10], 0 }
   0x2   :  { %9 = vsyncpa [#allocation8], 0  ;;  %s288_s9 = smov [#allocation6]   ;;  %s216_s13 = scalar_lea.hbm %s373_s0, 256 }
   0x3   :  { %s15_s10 = sshll.u32 %s288_s9, 4  ;;  %p217_p0 = scmp.ne.s32.totalorder %s373_s0, %s216_s13  ;;  %s16_s10 = int_to_ptr.vmem [resolvable:$true] %s15_s10 }
   0x4   :  { %p220_p1 = scmp.lt.u32.totalorder %s216_s13, %s373_s0 }
   0x6   :  { %p222_p2 = pnand %p220_p1, %p217_p0 }
   0x8   :  { %225 = shalt.err (!%p222_p2)
}
   0x9   :  { %s226_s18 = scalar_lea.vmem %s16_s10, 256  ;;  %p231_p4 = scmp.lt.s32.totalorder %s16_s10, %s16_s10 }
   0xa   :  { %p227_p3 = scmp.ne.s32.totalorder %s16_s10, %s226_s18  ;;  %p232_p5 = scmp.lt.s32.totalorder %s226_s18, %s226_s18 }
   0xc   :  { %p233_p6 = por %p232_p5, %p231_p4 }
   0xe   :  { %p234_p7 = pnand %p233_p6, %p227_p3 }
  0x10   :  { %237 = shalt.err (!%p234_p7)
}
  0x11   :  { %s289_s19 = smov 128   ;;  %s290_s20 = smov 8  }
  0x12   :  { %21 = dma.hbm_to_vmem [thread:$0]  %s373_s0, 256, %s16_s10, [#allocation7], %s289_s19, %s289_s19, %s290_s20  }
  0x13   :  { %s291_s23 = smov [#allocation9]   ;;  %s238_s27 = scalar_lea.hbm %s374_s1, 256 }
  0x14   :  { %s27_s24 = sshll.u32 %s291_s23, 4  ;;  %p239_p8 = scmp.ne.s32.totalorder %s374_s1, %s238_s27  ;;  %s28_s24 = int_to_ptr.vmem [resolvable:$true] %s27_s24 }
  0x15   :  { %p242_p9 = scmp.lt.u32.totalorder %s238_s27, %s374_s1 }
  0x17   :  { %p244_p10 = pnand %p242_p9, %p239_p8 }
  0x19   :  { %247 = shalt.err (!%p244_p10)
}
  0x1a   :  { %s248_s4 = scalar_lea.vmem %s28_s24, 256  ;;  %p253_p12 = scmp.lt.s32.totalorder %s28_s24, %s28_s24 }
  0x1b   :  { %p249_p11 = scmp.ne.s32.totalorder %s28_s24, %s248_s4  ;;  %p254_p13 = scmp.lt.s32.totalorder %s248_s4, %s248_s4 }
  0x1d   :  { %p255_p0 = por %p254_p13, %p253_p12 }
  0x1f   :  { %p256_p1 = pnand %p255_p0, %p249_p11 }
  0x21   :  { %259 = shalt.err (!%p256_p1)
}
  0x22   :  { %33 = dma.hbm_to_vmem [thread:$0]  %s374_s1, 256, %s28_s24, [#allocation10], %s289_s19, %s289_s19, %s290_s20  }
  0x23   :  { %282 = dma.done.wait [#allocation7], 256  }
  0x24   :  { %283 = vsyncadd [#allocation7], 4294967040 }
  0x25   :  { %284 = dma.done.wait [#allocation10], 256  }
  0x26   :  { %285 = vsyncadd [#allocation10], 4294967040  ;;  %vm44_vm0 = vcmask 7168   ;;  %v292_v0 = vmov -3.4028235e+38   ;;  %vm59_vm1 = vcmask 261120  }
  0x27   :  { %45 = vst.msk [vmem:[#allocation2] sm:$0xff] %vm44_vm0, %v292_v0  ;;  %46 = vst.msk [vmem:[#allocation2 + $0x8] sm:$0xff] %vm44_vm0, %v292_v0  ;;  %v53_v1 = vld [vmem:[#allocation6] sm:$0xff]  ;;  %v54_v2 = vld [vmem:[#allocation6 + $0x8] sm:$0xff]  ;;  %v293_v5 = vmov 0   ;;  %v294_v6 = vmov 0.0  }
  0x28   :  { %v60_v3 = vsel %vm59_vm1, %v53_v1, -inf  ;;  %v63_v4 = vsel %vm59_vm1, %v54_v2, -inf  ;;  %202 = vset.pattern.permute.xlu1 %v293_v5  ;;  %203 = vset.pattern.permute.xlu0 %v293_v5  ;;  %47 = vst.msk [vmem:[#allocation3] sm:$0xff] %vm44_vm0, %v294_v6  ;;  %48 = vst.msk [vmem:[#allocation3 + $0x8] sm:$0xff] %vm44_vm0, %v294_v6  ;;  %v55_v22 = vld [vmem:[#allocation9] sm:$0xff]  ;;  %v56_v26 = vld [vmem:[#allocation9 + $0x8] sm:$0xff] }
  0x29   :  { %61 = vmax.xlane.f32.xlu0 %v60_v3  ;;  %49 = vst.msk [vmem:[#allocation4] sm:$0xff] %vm44_vm0, %v294_v6  ;;  %50 = vst.msk [vmem:[#allocation4 + $0x8] sm:$0xff] %vm44_vm0, %v294_v6  ;;  %v123_v24 = vsel %vm59_vm1, %v55_v22, 0.0  ;;  %v126_v28 = vsel %vm59_vm1, %v56_v26, 0.0  ;;  %v109_v29 = vmul.f32 %v55_v22, %v53_v1  ;;  %v110_v31 = vmul.f32 %v56_v26, %v54_v2  ;;  %s295_s1 = smov [#allocation11]  }
  0x2a   :  { %51 = vst.msk [vmem:[#allocation5] sm:$0xff] %vm44_vm0, %v294_v6  ;;  %52 = vst.msk [vmem:[#allocation5 + $0x8] sm:$0xff] %vm44_vm0, %v294_v6  ;;  %s182_s6 = sshll.u32 %s295_s1, 4  ;;  %s183_s6 = int_to_ptr.vmem [resolvable:$true] %s182_s6 }
  0x2b   :  { %v111_v30 = vsel %vm59_vm1, %v109_v29, 0.0  ;;  %v114_v32 = vsel %vm59_vm1, %v110_v31, 0.0  ;;  %s260_s8 = scalar_lea.vmem %s183_s6, 128  ;;  %p265_p3 = scmp.lt.s32.totalorder %s183_s6, %s183_s6 }
  0x2c   :  { %p261_p2 = scmp.ne.s32.totalorder %s183_s6, %s260_s8  ;;  %p266_p4 = scmp.lt.s32.totalorder %s260_s8, %s260_s8 }
  0x2d   :  { %64 = vmax.xlane.f32.xlu0 %v63_v4 }
  0x2e   :  { %v57_v7 = vld [vmem:[#allocation2] sm:$0xff]  ;;  %v58_v10 = vld [vmem:[#allocation2 + $0x8] sm:$0xff]  ;;  %p267_p5 = por %p266_p4, %p265_p3 }
  0x2f   :  { %v68_v36 = vld [vmem:[#allocation3] sm:$0xff]  ;;  %v69_v40 = vld [vmem:[#allocation3 + $0x8] sm:$0xff] }
  0x30   :  { %v107_v51 = vld [vmem:[#allocation4] sm:$0xff]  ;;  %v108_v55 = vld [vmem:[#allocation4 + $0x8] sm:$0xff]  ;;  %p268_p6 = pnand %p267_p5, %p261_p2 }
  0x31   :  { %v121_v42 = vld [vmem:[#allocation5] sm:$0xff]  ;;  %v122_v48 = vld [vmem:[#allocation5 + $0x8] sm:$0xff] }
  0xb6   :  { %v62_v8 = vpop.xlane.xlu0 %61 }
  0xb7   :  { %v66_v9 = vmax.f32 %v57_v7, %v62_v8 }
  0xb9   :  { %v70_v11 = vsub.f32 %v57_v7, %v66_v9  ;;  %105 = vst.msk [vmem:[#allocation2] sm:$0xff] %vm44_vm0, %v66_v9  ;;  %80 = vperm.xlu1 %202, %v66_v9  }
  0xba   :  { %v65_v12 = vpop.xlane.xlu0 %64 }
  0xbb   :  { %v67_v13 = vmax.f32 %v58_v10, %v65_v12  ;;  %v72_v33 = vmul.f32 1.442695, %v70_v11 }
  0xbd   :  { %v71_v14 = vsub.f32 %v58_v10, %v67_v13  ;;  %106 = vst.msk [vmem:[#allocation2 + $0x8] sm:$0xff] %vm44_vm0, %v67_v13  ;;  %85 = vperm.xlu1 %202, %v67_v13  }
  0xbf   :  { %v74_v34 = vmul.f32 1.442695, %v71_v14 }
  0xc0   :  { %v136_v61 = vld [vmem:[#allocation2] sm:$0xff] }
  0xc4   :  { %v137_v3 = vld [vmem:[#allocation2 + $0x8] sm:$0xff] }
 0x138   :  { %v81_v15 = vpop.permute.xlu1 %80 }
 0x139   :  { %v88_v16 = vsub.f32 %v53_v1, %v81_v15 }
 0x13b   :  { %v90_v17 = vmul.f32 1.442695, %v88_v16 }
 0x13c   :  { %v86_v18 = vpop.permute.xlu1 %85 }
 0x13d   :  { %204 = vpow2.f32 %v90_v17  ;;  %v89_v19 = vsub.f32 %v54_v2, %v86_v18 }
 0x13f   :  { %v92_v20 = vmul.f32 1.442695, %v89_v19 }
 0x141   :  { %206 = vpow2.f32 %v92_v20 }
 0x142   :  { %208 = vpow2.f32 %v72_v33 }
 0x143   :  { %210 = vpow2.f32 %v74_v34 }
 0x147   :  { %v205_v21 = vpop.eup %204 }
 0x148   :  { %v94_v23 = vsel %vm59_vm1, %v205_v21, 0.0  ;;  %v166_v21 = vlaneseq }
 0x149   :  { %95 = vadd.xlane.f32.xlu0 %v94_v23 }
 0x14a   :  { %v167_v22 = vand.u32 127, %v166_v21  ;;  %v169_v23 = vshrl.u32 %v166_v21, 7 }
 0x14b   :  { %v207_v25 = vpop.eup %206 }
 0x14c   :  { %v97_v27 = vsel %vm59_vm1, %v207_v25, 0.0  ;;  %v209_v35 = vpop.eup %208  ;;  %vm170_vm2 = vcmp.eq.s32.totalorder %v167_v22, 0  ;;  %vm171_vm3 = vcmp.eq.s32.totalorder %v169_v23, 0 }
 0x14d   :  { %98 = vadd.xlane.f32.xlu1 %v97_v27  ;;  %124 = vadd.xlane.f32.xlu0 %v123_v24  ;;  %v76_v37 = vmul.f32 %v209_v35, %v68_v36  ;;  %v211_v38 = vpop.eup %210  ;;  %vm172_vm4 = vmand %vm170_vm2, %vm171_vm3 }
 0x14e   :  { %v77_v43 = vmul.f32 %v211_v38, %v69_v40 }
 0x151   :  { %127 = vadd.xlane.f32.xlu0 %v126_v28 }
 0x155   :  { %112 = vadd.xlane.f32.xlu0 %v111_v30 }
 0x159   :  { %115 = vadd.xlane.f32.xlu0 %v114_v32 }
 0x1d6   :  { %v96_v39 = vpop.xlane.xlu0 %95 }
 0x1d7   :  { %v100_v41 = vadd.f32 %v96_v39, %v76_v37 }
 0x1d9   :  { %103 = vst.msk [vmem:[#allocation3] sm:$0xff] %vm44_vm0, %v100_v41 }
 0x1da   :  { %v99_v44 = vpop.xlane.xlu1 %98  ;;  %v125_v45 = vpop.xlane.xlu0 %124 }
 0x1db   :  { %v101_v46 = vadd.f32 %v99_v44, %v77_v43  ;;  %v129_v47 = vadd.f32 %v125_v45, %v121_v42 }
 0x1dd   :  { %104 = vst.msk [vmem:[#allocation3 + $0x8] sm:$0xff] %vm44_vm0, %v101_v46  ;;  %131 = vst.msk [vmem:[#allocation5] sm:$0xff] %vm44_vm0, %v129_v47 }
 0x1de   :  { %v128_v49 = vpop.xlane.xlu0 %127 }
 0x1df   :  { %v130_v50 = vadd.f32 %v128_v49, %v122_v48 }
 0x1e0   :  { %v138_v52 = vld [vmem:[#allocation3] sm:$0xff] }
 0x1e1   :  { %132 = vst.msk [vmem:[#allocation5 + $0x8] sm:$0xff] %vm44_vm0, %v130_v50  ;;  %212 = vlog2.f32 %v138_v52 }
 0x1e2   :  { %v113_v53 = vpop.xlane.xlu0 %112 }
 0x1e3   :  { %v117_v54 = vadd.f32 %v113_v53, %v107_v51 }
 0x1e4   :  { %v139_v56 = vld [vmem:[#allocation3 + $0x8] sm:$0xff]  ;;  %v146_v0 = vld [vmem:[#allocation5] sm:$0xff] }
 0x1e5   :  { %119 = vst.msk [vmem:[#allocation4] sm:$0xff] %vm44_vm0, %v117_v54  ;;  %214 = vlog2.f32 %v139_v56 }
 0x1e6   :  { %v116_v57 = vpop.xlane.xlu0 %115 }
 0x1e7   :  { %v118_v58 = vadd.f32 %v116_v57, %v108_v55 }
 0x1e8   :  { %v147_v6 = vld [vmem:[#allocation5 + $0x8] sm:$0xff] }
 0x1e9   :  { %120 = vst.msk [vmem:[#allocation4 + $0x8] sm:$0xff] %vm44_vm0, %v118_v58 }
 0x1eb   :  { %v213_v59 = vpop.eup %212 }
 0x1ec   :  { %v141_v60 = vmul.f32 0.6931472, %v213_v59  ;;  %v150_v4 = vld [vmem:[#allocation4] sm:$0xff] }
 0x1ee   :  { %v144_v62 = vadd.f32 %v141_v60, %v136_v61 }
 0x1ef   :  { %v215_v63 = vpop.eup %214 }
 0x1f0   :  { %v143_v1 = vmul.f32 0.6931472, %v215_v63  ;;  %v148_v2 = vmul.f32 %v146_v0, %v144_v62  ;;  %v151_v7 = vld [vmem:[#allocation4 + $0x8] sm:$0xff] }
 0x1f2   :  { %v145_v5 = vadd.f32 %v143_v1, %v137_v3  ;;  %v152_v9 = vsub.f32 %v148_v2, %v150_v4 }
 0x1f4   :  { %v149_v8 = vmul.f32 %v147_v6, %v145_v5  ;;  %v154_v11 = vsel %vm44_vm0, %v152_v9, 0.0 }
 0x1f6   :  { %v153_v10 = vsub.f32 %v149_v8, %v151_v7 }
 0x1f8   :  { %v155_v12 = vsel %vm44_vm0, %v153_v10, 0.0 }
 0x1f9   :  { %v156_v13 = vadd.f32 %v155_v12, %v154_v11 }
 0x1fb   :  { %157 = vadd.xlane.f32.xlu0 %v156_v13 }
 0x288   :  { %v158_v14 = vpop.xlane.xlu0 %157 }
 0x289   :  { %v159_v15 = vrot.slane %v158_v14, 4 }
 0x28b   :  { %v160_v16 = vadd.f32 %v159_v15, %v158_v14 }
 0x28d   :  { %v161_v17 = vrot.slane %v160_v16, 2 }
 0x28f   :  { %v162_v18 = vadd.f32 %v161_v17, %v160_v16 }
 0x291   :  { %v163_v19 = vrot.slane %v162_v18, 1 }
 0x293   :  { %v164_v20 = vadd.f32 %v163_v19, %v162_v18 }
 0x295   :  { %192 = vpush %v164_v20 }
 0x2c6   :  { %s193_s7 = spop %192 }
 0x2c7   :  { %v173_v24 = vstv %s193_s7 }
 0x2c8   :  { %v174_v25 = vsel %vm172_vm4, %v173_v24, 0.0 }
 0x2c9   :  { %175 = vst [vmem:[#allocation11] sm:$0xff] %v174_v25 }
 0x2ca   :  { %271 = shalt.err (!%p268_p6)
}
 0x2cb   :  { %s272_s11 = scalar_lea.hbm %s375_s2, 128 }
 0x2cc   :  { %p273_p7 = scmp.ne.s32.totalorder %s375_s2, %s272_s11  ;;  %p276_p8 = scmp.lt.u32.totalorder %s272_s11, %s375_s2 }
 0x2ce   :  { %p278_p9 = pnand %p276_p8, %p273_p7 }
 0x2d0   :  { %281 = shalt.err (!%p278_p9)
}
 0x2d1   :  { %185 = dma.vmem_to_hbm [thread:$0]  %s183_s6, 128, %s375_s2, [#allocation8]  }
 0x2d2   :  { %286 = dma.done.wait [#allocation8], 128  }
 0x2d3   :  { %287 = vsyncadd [#allocation8], 4294967168 }
 0x2d4   :  { %189 = vsyncpa [#allocation7], 1 }
 0x2d5   :  { %190 = vsyncpa [#allocation10], 1 }
 0x2d6   :  { %191 = vsyncpa [#allocation8], 1 }

</bundles_post_ra>
